<compile_context>
chip_gen: v5e
topology: v5e:2x2
jax: 0.10.0
libtpu: 0.0.40
codegen_flags: <defaults>
</compile_context>

<pallas_src>
import functools

import jax
import jax.numpy as jnp
from jax import lax
from jax.experimental import pallas as pl
from jax.experimental.pallas import tpu as pltpu

LANES = 128
CHUNK_ROWS = 512                       # in-kernel chunk: bounds Mosaic temporaries (~256 KiB each)
TARGET_STEP_BYTES = 8 * 1024 * 1024    # combined input bytes DMA'd per grid step
VMEM_LIMIT_BYTES = 32 * 1024 * 1024


def _elementwise_loss(x, t, pos_weight):
    """Numerically-stable weighted BCE-with-logits, elementwise, in f32."""
    x = x.astype(jnp.float32)
    t = t.astype(jnp.float32)
    # loss = (1 - t) * x + (1 + (pw - 1) * t) * softplus(-x)
    softplus_neg_x = jnp.maximum(-x, 0.0) + jnp.log1p(jnp.exp(-jnp.abs(x)))
    return (1.0 - t) * x + (1.0 + (pos_weight - 1.0) * t) * softplus_neg_x


def _bce_sum_kernel(logits_ref, targets_ref, out_ref, *, pos_weight, block_rows,
                    chunk_rows, chunks_per_slice, num_data_blocks, rows_in_last,
                    total_blocks):
    i = pl.program_id(0)   # parallel slice (a TensorCore on v7x)
    j = pl.program_id(1)   # sequential block within the slice
    blk = i * chunks_per_slice + j

    # Reset this slice's resident accumulator at the start of its inner loop.
    @pl.when(j == 0)
    def _():
        out_ref[...] = jnp.zeros_like(out_ref)

    def chunk_partial(row_start, nrows, valid_rows):
        # nrows is static; valid_rows (if not None) masks the ragged tail rows
        # of the final data block (boundary DMA leaves garbage past the edge).
        x = logits_ref[pl.ds(row_start, nrows), :].astype(jnp.float32)
        t = targets_ref[pl.ds(row_start, nrows), :].astype(jnp.float32)
        softplus_neg_x = jnp.maximum(-x, 0.0) + jnp.log1p(jnp.exp(-jnp.abs(x)))
        loss = (1.0 - t) * x + (1.0 + (pos_weight - 1.0) * t) * softplus_neg_x
        if valid_rows is not None:
            row = lax.broadcasted_iota(jnp.int32, loss.shape, 0)
            loss = jnp.where(row < valid_rows, loss, 0.0)   # select: kills NaN/Inf garbage
        return jnp.sum(loss, axis=0, keepdims=True)          # (1, 128) lane partial

    def block_partial(valid_rows):
        # valid_rows is a static python int -> each call is a trace-time
        # specialization (unmasked steady state vs. masked ragged last block).
        n_full = valid_rows // chunk_rows
        rem_rows = valid_rows - n_full * chunk_rows

        def body(c, acc):
            r0 = pl.multiple_of(c * chunk_rows, chunk_rows)
            return acc + chunk_partial(r0, chunk_rows, None)

        acc = lax.fori_loop(0, n_full, body, jnp.zeros((1, LANES), jnp.float32))
        if rem_rows:
            start = n_full * chunk_rows
            size = min(chunk_rows, block_rows - start)
            acc = acc + chunk_partial(start, size,
                                      rem_rows if rem_rows < size else None)
        # Broadcast across the 8 sublanes so the accumulator update below is a
        # full, unmasked (8,128)-tile store (the wrapper reads back sublane 0).
        return jnp.broadcast_to(acc, (8, LANES))[None]        # (1, 8, 128)

    ragged = rows_in_last < block_rows
    num_full_blocks = num_data_blocks - (1 if ragged else 0)

    if (not ragged) and num_data_blocks == total_blocks:
        # Every grid step is a full block: single unmasked path.
        out_ref[...] += block_partial(block_rows)
    else:
        if num_full_blocks > 0:
            @pl.when(blk < num_full_blocks)
            def _():
                out_ref[...] += block_partial(block_rows)

        if ragged:
            @pl.when(blk == num_data_blocks - 1)
            def _():
                out_ref[...] += block_partial(rows_in_last)
        # Over-provisioned steps (blk >= num_data_blocks) contribute nothing.


def weighted_bce_with_logits_loss(logits, targets, pos_weight=4.0):
    """Mean-reduced BCEWithLogitsLoss with a scalar pos_weight (Pallas TPU kernel)."""
    assert logits.shape == targets.shape
    n = int(logits.size)
    assert n > 0
    pw = float(pos_weight)

    flat_logits = logits.reshape(-1)
    flat_targets = targets.reshape(-1)

    rows = n // LANES
    n_aligned = rows * LANES
    rem = n - n_aligned

    total = jnp.zeros((), jnp.float32)

    if rem:
        # <=127 trailing elements: tiny, evaluated directly in XLA
        # (no full-tensor pad / copy of the big inputs).
        total = total + jnp.sum(
            _elementwise_loss(flat_logits[n_aligned:], flat_targets[n_aligned:], pw))

    if rows:
        lp = flat_logits[:n_aligned] if rem else flat_logits
        tp = flat_targets[:n_aligned] if rem else flat_targets
        logits2d = lp.reshape(rows, LANES)
        targets2d = tp.reshape(rows, LANES)

        # ---- tiling: constant bytes per grid step (dtype-aware) -------------
        bytes_per_row = LANES * (logits2d.dtype.itemsize + targets2d.dtype.itemsize)
        target_rows = max(CHUNK_ROWS, (TARGET_STEP_BYTES // bytes_per_row) // 8 * 8)

        # Two parallel slices so v7x's two TensorCores stream independent HBM
        # ranges (harmless on single-core v5e/v6e); blocks are split evenly
        # between the slices so neither core does ~2x the work.
        num_slices = 2 if rows >= 16 else 1
        nb = -(-rows // target_rows)
        nb = -(-nb // num_slices) * num_slices              # multiple of num_slices
        block_rows = (-(-rows // nb) + 7) // 8 * 8          # ~rows/nb, multiple of 8
        chunk_rows = min(CHUNK_ROWS, block_rows)
        chunks_per_slice = nb // num_slices
        num_data_blocks = -(-rows // block_rows)            # blocks holding real data
        rows_in_last = rows - (num_data_blocks - 1) * block_rows

        def in_index_map(i, j):
            blkidx = i * chunks_per_slice + j
            # Clamp over-provisioned steps onto the last real block; the
            # kernel's predicates skip their contribution.
            return (jnp.minimum(blkidx, num_data_blocks - 1), 0)

        kernel = functools.partial(
            _bce_sum_kernel,
            pos_weight=pw,
            block_rows=block_rows,
            chunk_rows=chunk_rows,
            chunks_per_slice=chunks_per_slice,
            num_data_blocks=num_data_blocks,
            rows_in_last=rows_in_last,
            total_blocks=nb,
        )

        partials = pl.pallas_call(
            kernel,
            out_shape=jax.ShapeDtypeStruct((num_slices, 8, LANES), jnp.float32),
            grid_spec=pltpu.PrefetchScalarGridSpec(
                num_scalar_prefetch=0,
                grid=(num_slices, chunks_per_slice),
                in_specs=[
                    pl.BlockSpec((block_rows, LANES), in_index_map),
                    pl.BlockSpec((block_rows, LANES), in_index_map),
                ],
                out_specs=pl.BlockSpec((1, 8, LANES), lambda i, j: (i, 0, 0)),
            ),
            compiler_params=pltpu.CompilerParams(
                dimension_semantics=("parallel", "arbitrary"),
                vmem_limit_bytes=VMEM_LIMIT_BYTES,
            ),
        )(logits2d, targets2d)

        # All 8 sublanes of each slice hold identical lane partials; take one
        # sublane and finish the (tiny) cross-lane / cross-slice reduction here.
        total = total + jnp.sum(partials[:, 0, :])

    return (total / n).astype(jnp.float32)


def _reference(logits, targets, pos_weight=4.0):
    return jnp.mean(_elementwise_loss(logits, targets, float(pos_weight)))


if __name__ == "__main__":
    key = jax.random.PRNGKey(0)

    # (shape NCHW, logits dtype) -- exercises aligned, ragged-tail, bf16 block
    # sizing, and ragged-last-block / remainder-chunk / load-balanced paths.
    cases = [
        ((2, 4, 16, 16), jnp.float32),     # lane-aligned, 2 balanced slices
        ((2, 3, 17, 11), jnp.float32),     # not lane-aligned -> wrapper tail path
        ((2, 4, 32, 32), jnp.bfloat16),    # bf16 logits -> byte-sized blocks
        ((1, 1, 1025, 256), jnp.float32),  # ragged last block + remainder chunk
    ]

    for idx, (shape, ldtype) in enumerate(cases):
        k1, k2 = jax.random.split(jax.random.fold_in(key, idx))
        logits = jax.random.normal(k1, shape, jnp.float32).astype(ldtype)
        targets = (jax.random.uniform(k2, shape) > 0.5).astype(jnp.float32)

        out = jax.block_until_ready(
            weighted_bce_with_logits_loss(logits, targets, pos_weight=4.0))
        ref = jax.block_until_ready(_reference(logits, targets, pos_weight=4.0))
        assert jnp.allclose(out, ref, atol=1e-5, rtol=1e-5), (shape, out, ref)

    print("KERNEL_OK")
</pallas_src>

<mosaic_0001>
module attributes {stable_mosaic.version = 11 : i64} {
  func.func @_bce_sum_kernel(%arg0: i32, %arg1: i32, %arg2: memref<8x128xf32, #tpu.memory_space<vmem>>, %arg3: memref<8x128xf32, #tpu.memory_space<vmem>>, %arg4: memref<1x8x128xf32, #tpu.memory_space<vmem>>) attributes {dimension_semantics = [#tpu.dimension_semantics<parallel>, #tpu.dimension_semantics<arbitrary>], iteration_bounds = array<i64: 2, 1>, scalar_prefetch = 0 : i64, scratch_operands = 0 : i64, tpu.core_type = #tpu.core_type<tc>, window_params = [{transform_indices = @transform_0, window_bounds = array<i64: 8, 128>}, {transform_indices = @transform_1, window_bounds = array<i64: 8, 128>}, {transform_indices = @transform_2, window_bounds = array<i64: 1, 8, 128>}]} {
    %c0_i32 = arith.constant 0 : i32
    %0 = arith.cmpi eq, %arg1, %c0_i32 : i32
    %1 = arith.extui %0 : i1 to i32
    %c0_i32_0 = arith.constant 0 : i32
    %2 = arith.cmpi ne, %1, %c0_i32_0 : i32
    scf.if %2 {
      %cst_16 = arith.constant 0.000000e+00 : f32
      %38 = vector.broadcast %cst_16 : f32 to vector<1x8x128xf32>
      %c0_17 = arith.constant 0 : index
      %c0_18 = arith.constant 0 : index
      %c0_19 = arith.constant 0 : index
      %39 = vector.load %arg4[%c0_17, %c0_18, %c0_19] : memref<1x8x128xf32, #tpu.memory_space<vmem>>, vector<1x8x128xf32>
      tpu.vector_store %arg4[%c0_17, %c0_18, %c0_19], %38 {strides = array<i32>} : memref<1x8x128xf32, #tpu.memory_space<vmem>>, vector<1x8x128xf32>,
    } else {
    }
    %c0 = arith.constant 0 : index
    %c0_1 = arith.constant 0 : index
    %c0_2 = arith.constant 0 : index
    %3 = vector.load %arg4[%c0, %c0_1, %c0_2] : memref<1x8x128xf32, #tpu.memory_space<vmem>>, vector<1x8x128xf32>
    %cst = arith.constant 0.000000e+00 : f32
    %4 = vector.broadcast %cst : f32 to vector<1x128xf32>
    %c0_i32_3 = arith.constant 0 : i32
    %c8_i32 = arith.constant 8 : i32
    %5 = arith.muli %c0_i32_3, %c8_i32 : i32
    %6 = tpu.assume_multiple %5, 8 : i32
    %7 = arith.index_cast %6 : i32 to index
    %c0_4 = arith.constant 0 : index
    %8 = vector.load %arg2[%7, %c0_4] : memref<8x128xf32, #tpu.memory_space<vmem>>, vector<8x128xf32>
    %9 = arith.index_cast %6 : i32 to index
    %c0_5 = arith.constant 0 : index
    %10 = vector.load %arg3[%9, %c0_5] : memref<8x128xf32, #tpu.memory_space<vmem>>, vector<8x128xf32>
    %cst_6 = arith.constant 0.000000e+00 : f32
    %11 = vector.broadcast %cst_6 : f32 to vector<8x128xf32>
    %12 = arith.subf %11, %8 : vector<8x128xf32>
    %cst_7 = arith.constant 0.000000e+00 : f32
    %13 = vector.broadcast %cst_7 : f32 to vector<8x128xf32>
    %14 = arith.maximumf %12, %13 : vector<8x128xf32>
    %15 = math.absf %8 : vector<8x128xf32>
    %cst_8 = arith.constant 0.000000e+00 : f32
    %16 = vector.broadcast %cst_8 : f32 to vector<8x128xf32>
    %17 = arith.subf %16, %15 : vector<8x128xf32>
    %18 = math.exp %17 : vector<8x128xf32>
    %19 = math.log1p %18 : vector<8x128xf32>
    %20 = arith.addf %14, %19 : vector<8x128xf32>
    %cst_9 = arith.constant 1.000000e+00 : f32
    %21 = vector.broadcast %cst_9 : f32 to vector<8x128xf32>
    %22 = arith.subf %21, %10 : vector<8x128xf32>
    %23 = arith.mulf %22, %8 : vector<8x128xf32>
    %cst_10 = arith.constant 3.000000e+00 : f32
    %24 = vector.broadcast %cst_10 : f32 to vector<8x128xf32>
    %25 = arith.mulf %24, %10 : vector<8x128xf32>
    %cst_11 = arith.constant 1.000000e+00 : f32
    %26 = vector.broadcast %cst_11 : f32 to vector<8x128xf32>
    %27 = arith.addf %26, %25 : vector<8x128xf32>
    %28 = arith.mulf %27, %20 : vector<8x128xf32>
    %29 = arith.addf %23, %28 : vector<8x128xf32>
    %cst_12 = arith.constant dense<0.000000e+00> : vector<128xf32>
    %30 = vector.multi_reduction <add>, %29, %cst_12 [0] : vector<8x128xf32> to vector<128xf32>
    %31 = vector.shape_cast %30 : vector<128xf32> to vector<1x128xf32>
    %32 = arith.addf %4, %31 : vector<1x128xf32>
    %c1_i32 = arith.constant 1 : i32
    %33 = vector.shape_cast %32 : vector<1x128xf32> to vector<1x128xf32>
    %34 = vector.broadcast %33 : vector<1x128xf32> to vector<8x128xf32>
    %35 = vector.shape_cast %34 : vector<8x128xf32> to vector<1x8x128xf32>
    %36 = arith.addf %3, %35 : vector<1x8x128xf32>
    %c0_13 = arith.constant 0 : index
    %c0_14 = arith.constant 0 : index
    %c0_15 = arith.constant 0 : index
    %37 = vector.load %arg4[%c0_13, %c0_14, %c0_15] : memref<1x8x128xf32, #tpu.memory_space<vmem>>, vector<1x8x128xf32>
    tpu.vector_store %arg4[%c0_13, %c0_14, %c0_15], %36 {strides = array<i32>} : memref<1x8x128xf32, #tpu.memory_space<vmem>>, vector<1x8x128xf32>,
    return
  }
  func.func @transform_0(%arg0: i32, %arg1: i32) -> (i32, i32) {
    %c1_i32 = arith.constant 1 : i32
    %0 = arith.muli %arg0, %c1_i32 : i32
    %1 = arith.addi %0, %arg1 : i32
    %c1_i32_0 = arith.constant 1 : i32
    %2 = arith.minsi %1, %c1_i32_0 : i32
    %c0_i32 = arith.constant 0 : i32
    %c0_i32_1 = arith.constant 0 : i32
    return %2, %c0_i32 : i32, i32
  }
  func.func @transform_1(%arg0: i32, %arg1: i32) -> (i32, i32) {
    %c1_i32 = arith.constant 1 : i32
    %0 = arith.muli %arg0, %c1_i32 : i32
    %1 = arith.addi %0, %arg1 : i32
    %c1_i32_0 = arith.constant 1 : i32
    %2 = arith.minsi %1, %c1_i32_0 : i32
    %c0_i32 = arith.constant 0 : i32
    %c0_i32_1 = arith.constant 0 : i32
    return %2, %c0_i32 : i32, i32
  }
  func.func @transform_2(%arg0: i32, %arg1: i32) -> (i32, i32, i32) {
    %c0_i32 = arith.constant 0 : i32
    %c0_i32_0 = arith.constant 0 : i32
    %c0_i32_1 = arith.constant 0 : i32
    return %arg0, %c0_i32, %c0_i32_0 : i32, i32, i32
  }
}

</mosaic_0001>

<bundles_post_ra>
// kernel: tpu_custom_call.1
= control target key start
LH: loop header
LB: loop body
LE: loop exit
PB: predicated region body
PF: predicated region fallthrough
CT: control target
= control target key end

     0   :  { %s850_s0 = inlined_call_operand.hbm [shape: f32[16,128], index: 0, kind: input, shape index: {}]   ;;  %s851_s1 = inlined_call_operand.hbm [shape: f32[16,128], index: 1, kind: input, shape index: {}]   ;;  %s852_s2 = inlined_call_operand.hbm [shape: f32[2,8,128], index: 2, kind: output, shape index: {}]  }
   0x1   :  { %855 = sst [smem:[#allocation13_spill]] %s850_s0 }
   0x2   :  { %7 = vsyncpa [#allocation3], 0 }
   0x3   :  { %9 = vsyncpa [#allocation3 + $0x1], 0 }
   0x4   :  { %10 = vsyncpa [#allocation6], 0 }
   0x5   :  { %12 = vsyncpa [#allocation6 + $0x1], 0 }
   0x6   :  { %13 = vsyncpa [#allocation4], 0 }
   0x7   :  { %15 = vsyncpa [#allocation4 + $0x1], 0  ;;  %s691_s9 = smov 0   ;;  %s693_s10 = smov 0  }
   0x8   :  { %s695_s11 = smov 0   ;;  %s697_s12 = smov 0  }
   0x9   :  { %s699_s13 = smov 0   ;;  %s701_s14 = smov 0  }
   0xa   :  { %s703_s15 = smov 0   ;;  %s705_s16 = smov 0  }
   0xb   :  { %s707_s17 = smov 0  }
   0xc LB: > { %856 = sst [smem:[#allocation11_spill]] %s670_s16  ;;  %s392_s18 = sadd.s32 4294967295, %s674_s17   ;;  %s674_s17 = sphi %s707_s17, %s21_s17   ;;  %s670_s16 = sphi %s705_s16, %s864_s16   ;;  %s666_s15 = sphi %s703_s15, %s863_s15   ;;  %s662_s14 = sphi %s701_s14, %s870_s14   ;;  %s658_s13 = sphi %s699_s13, %s869_s13   ;;  %s654_s12 = sphi %s697_s12, %s868_s12   ;;  %s650_s11 = sphi %s695_s11, %s867_s11   ;;  %s646_s10 = sphi %s693_s10, %s866_s10   ;;  %s642_s9 = sphi %s691_s9, %s865_s9  }
   0xd   : > { %s393_s19 = sadd.s32 4294967294, %s674_s17   ;;  %s33_s20 = sadd.s32 1, %s670_s16 }
   0xe   : > { %p38_p0 = scmp.lt.s32.totalorder %s670_s16, 1  ;;  %p35_p1 = scmp.ge.s32.totalorder %s33_s20, 2 }
   0xf   : > { %s46_s21 = sadd.s32 1, %s662_s14  ;;  %p53_p2 = scmp.ne.s32.totalorder %s662_s14, %s658_s13 }
  0x10   : > { %s740_s22 = scalar_select %p38_p0, %s670_s16, 1 }
  0x11   : > { %s872_s20 = smov (%p35_p1, %s33_s20), 0  ;;  %p54_p3 = scmp.eq.s32.totalorder %s674_s17, 0 }
  0x12   : > { %857 = sst [smem:[#allocation12_spill]] %s872_s20  ;;  %p41_p4 = scmp.lt.s32.totalorder %s872_s20, 1 }
  0x13   : > { %p59_p5 = scmp.ne.s32.totalorder %s658_s13, %s654_s12  ;;  %p749_p6 = por %p54_p3, %p53_p2 }
  0x14   : > { %p60_p7 = scmp.eq.s32.totalorder %s392_s18, 0  ;;  %s101_s26 = ssub.s32 %s670_s16, %s872_s20 }
  0x15   : > { %s42_s24 = scalar_select %p41_p4, %s872_s20, 1 }
  0x16   : > { %p754_p8 = por %p60_p7, %p59_p5  ;;  %p102_p9 = scmp.eq.s32.totalorder %s101_s26, 0 }
  0x17   : > { %s43_s27 = ssub.s32 %s740_s22, %s42_s24  ;;  %s104_s28 = sadd.s32 1, %s650_s11 }
  0x18   : > { %p44_p10 = scmp.eq.s32.totalorder %s43_s27, 0  ;;  %p114_p11 = scmp.ne.s32.totalorder %s650_s11, %s646_s10 }
  0x19   : > { %s763_s29 = scalar_select %p102_p9, %s650_s11, %s104_s28  }
  0x1a   : > { %s766_s30 = scalar_select %p44_p10, %s662_s14, %s46_s21  }
  0x1b   : > { %p115_p12 = scmp.eq.s32.totalorder %s392_s18, 1  ;;  %p120_p13 = scmp.ne.s32.totalorder %s646_s10, %s642_s9 }
  0x1c   : > { %p121_p0 = scmp.eq.s32.totalorder %s393_s19, 1  ;;  %p395_p2 = scmp.ge.s32.totalorder %s674_s17, 2 }
  0x1d   : > { %p772_p1 = por %p115_p12, %p114_p11  ;;  %p425_p4 = scmp.lt.s32.totalorder %s674_s17, 2 }
  0x1e   : > { %p777_p3 = por %p121_p0, %p120_p13  ;;  %s141_s5 = sand.u32 1, %s662_s14  }
  0x1f   : > { %s397_s6 = sshll.u32 %s740_s22, 3  ;;  %s396_s7 = sshll.u32 %s141_s5, 3 }
  0x20   : > { %s862_s0 = sld [smem:[#allocation13_spill]]  ;;  %s145_s19 = scalar_lea.vmem [#allocation2], %s396_s7 }
  0x21   : > { %s156_s24 = sshll.u32 %s145_s19, 4  ;;  %p415_p5 = pnand %p425_p4, %p749_p6  ;;  %s157_s24 = int_to_ptr.vmem [resolvable:$true] %s156_s24 }
  0x22   : > { %p400_p7 = scmp.ge.s32.totalorder %s674_s17, 1  ;;  %p183_p9 = scmp.lt.s32.totalorder %s674_s17, 3 }
  0x23   : > { %s142_s26 = scalar_lea.sflag [#allocation3], %s141_s5  ;;  %s174_s22 = scalar_lea.hbm %s851_s1, %s397_s6 }
  0x24   : > { %p184_p10 = pnand %p400_p7, %p183_p9  ;;  %s176_s20 = sshll.u32 %s174_s22, 4  ;;  %s177_s20 = int_to_ptr.hbm [resolvable:$true] %s176_s20 }
  0x25   : > { %s167_s16 = scalar_lea.vmem [#allocation5], %s396_s7  ;;  %s164_s12 = scalar_lea.sflag [#allocation6], %s141_s5 }
  0x26   : > { %s152_s18 = scalar_lea.hbm %s862_s0, %s397_s6  ;;  %s178_s8 = sshll.u32 %s167_s16, 4  ;;  %s179_s8 = int_to_ptr.vmem [resolvable:$true] %s178_s8 }
  0x27   : > { %s154_s21 = sshll.u32 %s152_s18, 4  ;;  %187 = sbr.rel (%p184_p10) target bundleno = 95 (0x5f), region = 28  ;;  %s155_s21 = int_to_ptr.hbm [resolvable:$true] %s154_s21 }
  0x28   : > { %417 = dma.hbm_to_vmem [thread:$0]  (!%p415_p5), %s155_s21, 128, %s157_s24, %s142_s26  }
  0x29   : > { %420 = dma.hbm_to_vmem [thread:$0]  (!%p415_p5), %s177_s20, 128, %s179_s8, %s164_s12  }
  0x2a   : > { %s189_s23 = sand.u32 (!%p184_p10), 1, %s658_s13  }
  0x2b   : > { %s401_s18 = sshll.u32 (!%p184_p10), %s189_s23, 3  ;;  %s190_s19 = scalar_lea.sflag (!%p184_p10), [#allocation3], %s189_s23 }
  0x2c   : > { %s193_s0 = scalar_lea.vmem [#allocation2], %s401_s18 }
  0x2d   : > { %629 = dma.done.wait (%p754_p8), %s190_s19, 128  }
  0x2e   : > { %631 = vsyncadd (%p754_p8), %s190_s19, 4294967168  ;;  %s200_s6 = scalar_lea.sflag [#allocation6], %s189_s23  ;;  %s203_s7 = scalar_lea.vmem [#allocation5], %s401_s18 }
  0x2f   : > { %633 = dma.done.wait (%p754_p8), %s200_s6, 128  }
  0x30   : > { %635 = vsyncadd (%p754_p8), %s200_s6, 4294967168  ;;  %v242_v0 = vld [vmem:[%s193_s0] sm:$0xff]  ;;  %v243_v7 = vld [vmem:[%s203_s7] sm:$0xff]  ;;  %s227_s0 = sand.u32 1, %s646_s10   ;;  %s405_s20 = sshll.u32 %s666_s15, 3 }
  0x31   : > { %v246_v1 = vand.u32 2147483647, %v242_v0  ;;  %v244_v9 = vsub.f32 0.0, %v242_v0  ;;  %v262_v11 = vmul.f32 3.0, %v243_v7  ;;  %v260_v15 = vsub.f32 1.0, %v243_v7  ;;  %s403_s16 = sshll.u32 %s227_s0, 3  ;;  %s286_s21 = scalar_lea.hbm %s852_s2, %s405_s20 }
  0x32   : > { %s229_s24 = scalar_lea.vmem [#allocation7], %s403_s16  ;;  %s290_s27 = sshll.u32 %s286_s21, 4  ;;  %s291_s27 = int_to_ptr.hbm [resolvable:$true] %s290_s27 }
  0x33   : > { %v247_v2 = vsub.f32 0.0, %v246_v1  ;;  %v245_v14 = vmax.f32 %v244_v9, 0.0  ;;  %v263_v17 = vadd.f32 1.0, %v262_v11  ;;  %v261_v20 = vmul.f32 %v260_v15, %v242_v0  ;;  %s288_s26 = sshll.u32 %s229_s24, 4  ;;  %s276_s28 = scalar_lea.sflag [#allocation4], %s227_s0  ;;  %s289_s26 = int_to_ptr.vmem [resolvable:$true] %s288_s26 }
  0x34   : > { %s578_s22 = sshra.s32 %s291_s27, 4  ;;  %s584_s23 = scalar_lea.hbm %s852_s2, 16  ;;  %s579_s22 = int_to_ptr.hbm [resolvable:$true] %s578_s22 }
  0x35   : > { %v248_v3 = vmul.f32 1.442695, %v247_v2  ;;  %s580_s8 = scalar_lea.hbm %s579_s22, 8  ;;  %p585_p12 = scmp.lt.s32.totalorder %s579_s22, %s852_s2 }
  0x36   : > { %p581_p6 = scmp.ne.s32.totalorder %s579_s22, %s580_s8  ;;  %p586_p13 = scmp.lt.s32.totalorder %s584_s23, %s580_s8 }
  0x37   : > { %500 = vpow2.f32 %v248_v3 }
  0x38   : > { %p582_p8 = pnand %p581_p6, %p772_p1  ;;  %p587_p0 = por %p586_p13, %p585_p12 }
  0x3a   : > { %p583_p11 = pneg %p582_p8 }
  0x3c   : > { %p588_p4 = pnand %p587_p0, %p583_p11 }
  0x3d   : > { %v501_v4 = vpop.eup %500 }
  0x3e   : > { %v250_v5 = vadd.f32 1.0, %v501_v4  ;;  %v253_v6 = vmul.f32 -0.5, %v501_v4  ;;  %v256_v10 = vand.u32 2147483647, %v501_v4 }
  0x40   : > { %502 = vlog2.f32 %v250_v5  ;;  %v254_v8 = vadd.f32 1.0, %v253_v6  ;;  %vm257_vm0 = vcmp.lt.f32.partialorder %v256_v10, 0.0004427343 }
  0x42   : > { %v255_v12 = vmul.f32 %v501_v4, %v254_v8 }
  0x46   : > { %v503_v13 = vpop.eup %502 }
  0x47   : > { %v252_v16 = vmul.f32 0.6931472, %v503_v13 }
  0x49   : > { %v258_v18 = vsel %vm257_vm0, %v255_v12, %v252_v16 }
  0x4a   : > { %v259_v19 = vadd.f32 %v258_v18, %v245_v14 }
  0x4c   : > { %v264_v21 = vmul.f32 %v263_v17, %v259_v19 }
  0x4e   : > { %v265_v22 = vadd.f32 %v264_v21, %v261_v20 }
  0x50   : > { %v266_v23 = vrot.slane %v265_v22, 4 }
  0x52   : > { %v267_v24 = vadd.f32 %v266_v23, %v265_v22 }
  0x54   : > { %v268_v25 = vrot.slane %v267_v24, 2 }
  0x56   : > { %v269_v26 = vadd.f32 %v268_v25, %v267_v24 }
  0x58   : > { %v270_v27 = vrot.slane %v269_v26, 1 }
  0x5a   : > { %v271_v28 = vadd.f32 %v270_v27, %v269_v26 }
  0x5c   : > { %274 = vst [vmem:[%s229_s24] sm:$0xff] %v271_v28 }
  0x5d   : > { %591 = shalt.err (!%p588_p4)
}
  0x5e   : > { %412 = dma.vmem_to_hbm [thread:$0]  (%p772_p1), %s289_s26, 128, %s291_s27, %s276_s28  }
  0x5f PF: > { %s302_s6 = sand.u32 1, %s642_s9   ;;  %p422_p5 = pnand %p395_p2, %p777_p3 }
  0x60   : > { %s303_s7 = scalar_lea.sflag [#allocation4], %s302_s6 }
  0x61   : > { %p423_p7 = pneg %p422_p5 }
  0x63   : > { %637 = dma.done.wait (%p423_p7), %s303_s7, 128  }
  0x64   : > { %639 = vsyncadd (%p423_p7), %s303_s7, 4294967168  ;;  %s21_s17 = sadd.s32 1, %s674_s17   ;;  %s863_s15 = sld [smem:[#allocation11_spill]] }
  0x65   : > { %p18_p9 = scmp.ge.s32.totalorder %s21_s17, 4   ;;  %s864_s16 = sld [smem:[#allocation12_spill]] }
  0x66   : > { %s865_s9 = smov %s646_s10  ;;  %s866_s10 = smov %s650_s11 }
  0x67   : > { %s867_s11 = smov %s763_s29  ;;  %s868_s12 = smov %s658_s13 }
  0x68   : > { %s869_s13 = smov %s662_s14  ;;  %s870_s14 = smov %s766_s30 }
  0x69   :  { %20 = sbr.rel (!%p18_p9) target bundleno = 12 (0xc), region = 90 }
  0x6e   :  { %309 = vsyncpa [#allocation3], 1 }
  0x6f   :  { %311 = vsyncpa [#allocation3 + $0x1], 1 }
  0x70   :  { %312 = vsyncpa [#allocation6], 1 }
  0x71   :  { %314 = vsyncpa [#allocation6 + $0x1], 1 }
  0x72   :  { %315 = vsyncpa [#allocation4], 1 }
  0x73   :  { %317 = vsyncpa [#allocation4 + $0x1], 1 }

</bundles_post_ra>
